<compile_context>
chip_gen: v5e
topology: v5e:2x2
jax: 0.10.0
libtpu: 0.0.40
codegen_flags: <defaults>
</compile_context>

<pallas_src>
import functools

import jax
import jax.numpy as jnp
from jax.experimental import pallas as pl
from jax.experimental.pallas import tpu as pltpu

# Logical model dims.
D_IN, D_H1, D_H2, D_OUT = 4, 100, 50, 3
# Lane-aligned (padded) hidden dims used inside the kernel.
P_H1, P_H2 = 128, 128
# Rows processed per in-kernel sub-block (keeps intermediates in vregs).
SUB_B = 128


def _round_up(x, m):
    return ((x + m - 1) // m) * m


def dnn_kernel(x_ref, w1_ref, b1_ref, w2_ref, b2_ref, w3_ref, b3_ref, o_ref,
               *, sub_b):
    # Weights/biases are tiny and VMEM-resident; hoist the loads out of the loop.
    w1 = w1_ref[...]   # (4, 128)   f32
    b1 = b1_ref[...]   # (1, 128)   f32
    w2 = w2_ref[...]   # (128, 128) bf16
    b2 = b2_ref[...]   # (1, 128)   f32
    w3 = w3_ref[...]   # (128, 3)   bf16
    b3 = b3_ref[...]   # (1, 3)     f32

    n_sub = x_ref.shape[0] // sub_b  # static

    @pl.loop(0, n_sub)
    def _(s):
        i = pl.multiple_of(s * sub_b, sub_b)
        x = x_ref[pl.ds(i, sub_b), :]                                # (sub_b, 4) f32

        # fc1 + ReLU: f32 matmul (K=4 is negligible flops), downcast right after ReLU.
        h1 = jnp.dot(x, w1, preferred_element_type=jnp.float32) + b1
        h1 = jnp.maximum(h1, 0.0).astype(jnp.bfloat16)

        # fc2 + ReLU: bf16 MXU matmul, f32 accumulate, immediate downcast.
        h2 = jnp.dot(h1, w2, preferred_element_type=jnp.float32) + b2
        h2 = jnp.maximum(h2, 0.0).astype(jnp.bfloat16)

        # fc3: logits last dim stays 3 (unpadded) so log_softmax needs no masking.
        logits = jnp.dot(h2, w3, preferred_element_type=jnp.float32) + b3

        # log_softmax over the feature axis (torch dim=1), in f32.
        m = jnp.max(logits, axis=-1, keepdims=True)
        shifted = logits - m
        lse = jnp.log(jnp.sum(jnp.exp(shifted), axis=-1, keepdims=True))
        o_ref[pl.ds(i, sub_b), :] = shifted - lse


def prepare_params(w1, b1, w2, b2, w3, b3):
    """One-time pad/cast of parameters (hoisted out of the forward pass).

    Weights are stored (in, out); hidden dims are zero-padded to 128 lanes.
    Padded columns stay exactly zero through ReLU, so results match the
    unpadded math; the logits dim is left at 3.
    """
    w1p = jnp.zeros((D_IN, P_H1), jnp.float32).at[:, :D_H1].set(w1.astype(jnp.float32))
    b1p = jnp.zeros((1, P_H1), jnp.float32).at[:, :D_H1].set(b1.reshape(1, D_H1))
    w2p = jnp.zeros((P_H1, P_H2), jnp.bfloat16).at[:D_H1, :D_H2].set(w2.astype(jnp.bfloat16))
    b2p = jnp.zeros((1, P_H2), jnp.float32).at[:, :D_H2].set(b2.reshape(1, D_H2))
    w3p = jnp.zeros((P_H2, D_OUT), jnp.bfloat16).at[:D_H2, :].set(w3.astype(jnp.bfloat16))
    b3p = b3.reshape(1, D_OUT).astype(jnp.float32)
    return w1p, b1p, w2p, b2p, w3p, b3p


def _choose_tiles(B, tile_b):
    """Pick (tile_b, padded_batch, n_steps, sub_block) with minimal over-padding
    and >= 2 grid steps when the batch allows (v7x megacore sharding)."""
    if B <= SUB_B:
        tb = _round_up(max(B, 8), 8)
        return tb, tb, 1, tb
    bp0 = _round_up(B, SUB_B)
    n = (bp0 + tile_b - 1) // tile_b
    if bp0 >= 2 * SUB_B:
        n = max(n, 2)
    tb = _round_up(-(-bp0 // n), SUB_B)
    return tb, n * tb, n, SUB_B


@functools.partial(jax.jit, static_argnames=("tile_b",))
def dnn_forward(x, w1p, b1p, w2p, b2p, w3p, b3p, *, tile_b=8192):
    """x: (B, 4) f32; params from prepare_params; returns (B, 3) f32 log-probs."""
    B = x.shape[0]
    tb, Bp, n_steps, sub_b = _choose_tiles(B, tile_b)

    xp = x.astype(jnp.float32)
    if Bp != B:
        # Tail-only zero pad of the batch axis (feature dim stays raw f32 width 4).
        xp = jnp.pad(xp, ((0, Bp - B), (0, 0)))

    kernel = functools.partial(dnn_kernel, sub_b=sub_b)
    const2 = lambda i: (0, 0)  # weights/biases: same (full) block every step

    flops = 2 * Bp * (D_IN * P_H1 + P_H1 * P_H2 + P_H2 * D_OUT)
    bytes_accessed = (Bp * D_IN * 4 + Bp * D_OUT * 4
                      + w1p.size * 4 + w2p.size * 2 + w3p.size * 2
                      + (b1p.size + b2p.size + b3p.size) * 4)

    out_p = pl.pallas_call(
        kernel,
        out_shape=jax.ShapeDtypeStruct((Bp, D_OUT), jnp.float32),
        grid_spec=pltpu.PrefetchScalarGridSpec(
            num_scalar_prefetch=0,
            grid=(n_steps,),
            in_specs=[
                pl.BlockSpec((tb, D_IN), lambda i: (i, 0)),   # raw f32 x tile, pipelined
                pl.BlockSpec((D_IN, P_H1), const2),           # w1 (resident)
                pl.BlockSpec((1, P_H1), const2),              # b1
                pl.BlockSpec((P_H1, P_H2), const2),           # w2
                pl.BlockSpec((1, P_H2), const2),              # b2
                pl.BlockSpec((P_H2, D_OUT), const2),          # w3
                pl.BlockSpec((1, D_OUT), const2),             # b3
            ],
            out_specs=pl.BlockSpec((tb, D_OUT), lambda i: (i, 0)),
        ),
        compiler_params=pltpu.CompilerParams(
            dimension_semantics=("parallel",),
            vmem_limit_bytes=32 * 1024 * 1024,
        ),
        cost_estimate=pl.CostEstimate(
            flops=flops,
            transcendentals=Bp * (D_OUT + 1),
            bytes_accessed=bytes_accessed,
        ),
    )(xp, w1p, b1p, w2p, b2p, w3p, b3p)

    return out_p[:B] if Bp != B else out_p


def init_linear(key, fan_in, fan_out):
    # Deterministic init mimicking nn.Linear's U(-1/sqrt(fan_in), 1/sqrt(fan_in)).
    kw, kb = jax.random.split(key)
    bound = 1.0 / jnp.sqrt(jnp.float32(fan_in))
    # Stored as (in, out) so the kernel does x @ W (== torch x @ W.T + b with W (out, in)).
    w = jax.random.uniform(kw, (fan_in, fan_out), jnp.float32, -bound, bound)
    b = jax.random.uniform(kb, (fan_out,), jnp.float32, -bound, bound)
    return w, b


def dnn_reference(x, w1, b1, w2, b2, w3, b3):
    h1 = jnp.maximum(x @ w1 + b1, 0.0)
    h2 = jnp.maximum(h1 @ w2 + b2, 0.0)
    logits = h2 @ w3 + b3
    return jax.nn.log_softmax(logits, axis=1)


if __name__ == "__main__":
    key = jax.random.PRNGKey(0)
    kx, k1, k2, k3 = jax.random.split(key, 4)

    batch = 8
    x = jax.random.normal(kx, (batch, D_IN), jnp.float32)

    w1, b1 = init_linear(k1, D_IN, D_H1)
    w2, b2 = init_linear(k2, D_H1, D_H2)
    w3, b3 = init_linear(k3, D_H2, D_OUT)

    # One-time parameter pad/cast (hoisted out of the forward pass).
    params = prepare_params(w1, b1, w2, b2, w3, b3)

    out = dnn_forward(x, *params)
    jax.block_until_ready(out)

    assert out.shape == (batch, D_OUT)

    # log_softmax rows must exp-sum to ~1 (exact property, independent of bf16).
    row_sums = jnp.sum(jnp.exp(out), axis=1)
    assert jnp.allclose(row_sums, 1.0, atol=1e-5)

    # Numerical check vs f32 reference (loose tolerance: bf16 matmul operands in fc2/fc3).
    ref = dnn_reference(x, w1, b1, w2, b2, w3, b3)
    assert jnp.allclose(out, ref, atol=5e-2, rtol=5e-2)

    print("KERNEL_OK")
</pallas_src>

<mosaic_0001>
module attributes {stable_mosaic.version = 11 : i64} {
  func.func @dnn_kernel(%arg0: i32, %arg1: memref<8x4xf32, #tpu.memory_space<vmem>>, %arg2: memref<4x128xf32, #tpu.memory_space<vmem>>, %arg3: memref<1x128xf32, #tpu.memory_space<vmem>>, %arg4: memref<128x128xbf16, #tpu.memory_space<vmem>>, %arg5: memref<1x128xf32, #tpu.memory_space<vmem>>, %arg6: memref<128x3xbf16, #tpu.memory_space<vmem>>, %arg7: memref<1x3xf32, #tpu.memory_space<vmem>>, %arg8: memref<8x3xf32, #tpu.memory_space<vmem>>) attributes {dimension_semantics = [#tpu.dimension_semantics<parallel>], iteration_bounds = array<i64: 1>, scalar_prefetch = 0 : i64, scratch_operands = 0 : i64, tpu.core_type = #tpu.core_type<tc>, window_params = [{transform_indices = @transform_0, window_bounds = array<i64: 8, 4>}, {pipeline_mode = #tpu.pipeline_mode<synchronous>, transform_indices = @transform_1, window_bounds = array<i64: 4, 128>}, {pipeline_mode = #tpu.pipeline_mode<synchronous>, transform_indices = @transform_2, window_bounds = array<i64: 1, 128>}, {pipeline_mode = #tpu.pipeline_mode<synchronous>, transform_indices = @transform_3, window_bounds = array<i64: 128, 128>}, {pipeline_mode = #tpu.pipeline_mode<synchronous>, transform_indices = @transform_4, window_bounds = array<i64: 1, 128>}, {pipeline_mode = #tpu.pipeline_mode<synchronous>, transform_indices = @transform_5, window_bounds = array<i64: 128, 3>}, {pipeline_mode = #tpu.pipeline_mode<synchronous>, transform_indices = @transform_6, window_bounds = array<i64: 1, 3>}, {transform_indices = @transform_7, window_bounds = array<i64: 8, 3>}]} {
    %c0 = arith.constant 0 : index
    %c0_0 = arith.constant 0 : index
    %0 = vector.load %arg2[%c0, %c0_0] : memref<4x128xf32, #tpu.memory_space<vmem>>, vector<4x128xf32>
    %c0_1 = arith.constant 0 : index
    %c0_2 = arith.constant 0 : index
    %1 = vector.load %arg3[%c0_1, %c0_2] : memref<1x128xf32, #tpu.memory_space<vmem>>, vector<1x128xf32>
    %c0_3 = arith.constant 0 : index
    %c0_4 = arith.constant 0 : index
    %2 = vector.load %arg4[%c0_3, %c0_4] : memref<128x128xbf16, #tpu.memory_space<vmem>>, vector<128x128xbf16>
    %c0_5 = arith.constant 0 : index
    %c0_6 = arith.constant 0 : index
    %3 = vector.load %arg5[%c0_5, %c0_6] : memref<1x128xf32, #tpu.memory_space<vmem>>, vector<1x128xf32>
    %c0_7 = arith.constant 0 : index
    %c0_8 = arith.constant 0 : index
    %4 = vector.load %arg6[%c0_7, %c0_8] : memref<128x3xbf16, #tpu.memory_space<vmem>>, vector<128x3xbf16>
    %c0_9 = arith.constant 0 : index
    %c0_10 = arith.constant 0 : index
    %5 = vector.load %arg7[%c0_9, %c0_10] : memref<1x3xf32, #tpu.memory_space<vmem>>, vector<1x3xf32>
    %c0_i32 = arith.constant 0 : i32
    %c1_i32 = arith.constant 1 : i32
    %6 = arith.muli %c0_i32, %c1_i32 : i32
    %c0_i32_11 = arith.constant 0 : i32
    %7 = arith.addi %c0_i32_11, %6 : i32
    %c8_i32 = arith.constant 8 : i32
    %8 = arith.muli %7, %c8_i32 : i32
    %9 = tpu.assume_multiple %8, 8 : i32
    %10 = arith.index_cast %9 : i32 to index
    %c0_12 = arith.constant 0 : index
    %11 = vector.load %arg1[%10, %c0_12] : memref<8x4xf32, #tpu.memory_space<vmem>>, vector<8x4xf32>
    %cst = arith.constant dense<0.000000e+00> : vector<8x128xf32>
    %12 = tpu.matmul %11, %0, %cst {dimension_numbers = #tpu.dot_dimension_numbers<[1], [0], [0], [1], [0, 0, 1, 1], [], []>} : vector<8x4xf32>, vector<4x128xf32>, vector<8x128xf32> -> vector<8x128xf32>
    %13 = vector.broadcast %1 : vector<1x128xf32> to vector<8x128xf32>
    %14 = arith.addf %12, %13 : vector<8x128xf32>
    %cst_13 = arith.constant 0.000000e+00 : f32
    %15 = vector.broadcast %cst_13 : f32 to vector<8x128xf32>
    %16 = arith.maximumf %14, %15 : vector<8x128xf32>
    %17 = arith.truncf %16 : vector<8x128xf32> to vector<8x128xbf16>
    %cst_14 = arith.constant dense<0.000000e+00> : vector<8x128xf32>
    %18 = tpu.matmul %17, %2, %cst_14 {dimension_numbers = #tpu.dot_dimension_numbers<[1], [0], [0], [1], [0, 0, 1, 1], [], []>} : vector<8x128xbf16>, vector<128x128xbf16>, vector<8x128xf32> -> vector<8x128xf32>
    %19 = vector.broadcast %3 : vector<1x128xf32> to vector<8x128xf32>
    %20 = arith.addf %18, %19 : vector<8x128xf32>
    %cst_15 = arith.constant 0.000000e+00 : f32
    %21 = vector.broadcast %cst_15 : f32 to vector<8x128xf32>
    %22 = arith.maximumf %20, %21 : vector<8x128xf32>
    %23 = arith.truncf %22 : vector<8x128xf32> to vector<8x128xbf16>
    %cst_16 = arith.constant dense<0.000000e+00> : vector<8x3xf32>
    %24 = tpu.matmul %23, %4, %cst_16 {dimension_numbers = #tpu.dot_dimension_numbers<[1], [0], [0], [1], [0, 0, 1, 1], [], []>} : vector<8x128xbf16>, vector<128x3xbf16>, vector<8x3xf32> -> vector<8x3xf32>
    %25 = vector.broadcast %5 : vector<1x3xf32> to vector<8x3xf32>
    %26 = arith.addf %24, %25 : vector<8x3xf32>
    %cst_17 = arith.constant dense<0xFF800000> : vector<8xf32>
    %27 = vector.multi_reduction <maximumf>, %26, %cst_17 [1] : vector<8x3xf32> to vector<8xf32>
    %28 = vector.shape_cast %27 : vector<8xf32> to vector<8x1xf32>
    %29 = vector.broadcast %28 : vector<8x1xf32> to vector<8x3xf32>
    %30 = arith.subf %26, %29 : vector<8x3xf32>
    %31 = math.exp %30 : vector<8x3xf32>
    %cst_18 = arith.constant dense<0.000000e+00> : vector<8xf32>
    %32 = vector.multi_reduction <add>, %31, %cst_18 [1] : vector<8x3xf32> to vector<8xf32>
    %33 = vector.shape_cast %32 : vector<8xf32> to vector<8x1xf32>
    %34 = math.log %33 : vector<8x1xf32>
    %35 = vector.broadcast %34 : vector<8x1xf32> to vector<8x3xf32>
    %36 = arith.subf %30, %35 : vector<8x3xf32>
    %37 = arith.index_cast %9 : i32 to index
    %c0_19 = arith.constant 0 : index
    %38 = vector.load %arg8[%37, %c0_19] : memref<8x3xf32, #tpu.memory_space<vmem>>, vector<8x3xf32>
    tpu.vector_store %arg8[%37, %c0_19], %36 {strides = array<i32>} : memref<8x3xf32, #tpu.memory_space<vmem>>, vector<8x3xf32>,
    %c1_i32_20 = arith.constant 1 : i32
    return
  }
  func.func @transform_0(%arg0: i32) -> (i32, i32) {
    %c0_i32 = arith.constant 0 : i32
    %c0_i32_0 = arith.constant 0 : i32
    return %arg0, %c0_i32 : i32, i32
  }
  func.func @transform_1(%arg0: i32) -> (i32, i32) {
    %c0_i32 = arith.constant 0 : i32
    %c0_i32_0 = arith.constant 0 : i32
    %c0_i32_1 = arith.constant 0 : i32
    return %c0_i32, %c0_i32_0 : i32, i32
  }
  func.func @transform_2(%arg0: i32) -> (i32, i32) {
    %c0_i32 = arith.constant 0 : i32
    %c0_i32_0 = arith.constant 0 : i32
    %c0_i32_1 = arith.constant 0 : i32
    return %c0_i32, %c0_i32_0 : i32, i32
  }
  func.func @transform_3(%arg0: i32) -> (i32, i32) {
    %c0_i32 = arith.constant 0 : i32
    %c0_i32_0 = arith.constant 0 : i32
    %c0_i32_1 = arith.constant 0 : i32
    return %c0_i32, %c0_i32_0 : i32, i32
  }
  func.func @transform_4(%arg0: i32) -> (i32, i32) {
    %c0_i32 = arith.constant 0 : i32
    %c0_i32_0 = arith.constant 0 : i32
    %c0_i32_1 = arith.constant 0 : i32
    return %c0_i32, %c0_i32_0 : i32, i32
  }
  func.func @transform_5(%arg0: i32) -> (i32, i32) {
    %c0_i32 = arith.constant 0 : i32
    %c0_i32_0 = arith.constant 0 : i32
    %c0_i32_1 = arith.constant 0 : i32
    return %c0_i32, %c0_i32_0 : i32, i32
  }
  func.func @transform_6(%arg0: i32) -> (i32, i32) {
    %c0_i32 = arith.constant 0 : i32
    %c0_i32_0 = arith.constant 0 : i32
    %c0_i32_1 = arith.constant 0 : i32
    return %c0_i32, %c0_i32_0 : i32, i32
  }
  func.func @transform_7(%arg0: i32) -> (i32, i32) {
    %c0_i32 = arith.constant 0 : i32
    %c0_i32_0 = arith.constant 0 : i32
    return %arg0, %c0_i32 : i32, i32
  }
}

</mosaic_0001>

<bundles_post_ra>
// kernel: dnn_forward.1
= control target key start
LH: loop header
LB: loop body
LE: loop exit
PB: predicated region body
PF: predicated region fallthrough
CT: control target
= control target key end

     0   :  { %vm70_vm0 = vcmask 1043456   ;;  %vm66_vm1 = vcmask 31744   ;;  %vm226_vm2 = vcmask 23552   ;;  %s442_s1 = inlined_call_operand.vmem [shape: f32[4,128], index: 1, kind: input, shape index: {}]   ;;  %s443_s0 = inlined_call_operand.vmem [shape: f32[8,4], index: 0, kind: input, shape index: {}]   ;;  %s444_s3 = inlined_call_operand.vmem [shape: bf16[128,128], index: 3, kind: input, shape index: {}]   ;;  %s445_s2 = inlined_call_operand.vmem [shape: f32[1,128], index: 2, kind: input, shape index: {}]   ;;  %s446_s4 = inlined_call_operand.vmem [shape: f32[1,128], index: 4, kind: input, shape index: {}]   ;;  %s447_s5 = inlined_call_operand.vmem [shape: bf16[128,3], index: 5, kind: input, shape index: {}]   ;;  %s448_s6 = inlined_call_operand.vmem [shape: f32[1,3], index: 6, kind: input, shape index: {}]   ;;  %s449_s7 = inlined_call_operand.vmem [shape: f32[8,3], index: 7, kind: output, shape index: {}]  }
   0x1   :  { %v26_v0 = vld [vmem:[%s442_s1] sm:$0xf]  ;;  %v317_v2 = vld [vmem:[%s444_s3 + $0x38] sm:$0xff]  ;;  %v316_v3 = vld [vmem:[%s444_s3 + $0x30] sm:$0xff] }
   0x2   :  { %v62_v1 = vld [vmem:[%s443_s0] sm:$0xff]  ;;  %244 = vmatpush.msk.msra.mxu0 %vm70_vm0, %v26_v0  ;;  %147 = vmatpush.bf16.msra.mxu1 %v317_v2  ;;  %v315_v4 = vld [vmem:[%s444_s3 + $0x28] sm:$0xff]  ;;  %v313_v6 = vld [vmem:[%s444_s3 + $0x18] sm:$0xff] }
   0x3   :  { %245 = vmatmul.msk.f32.vlgmr.msra.gmra.mxu0 %vm66_vm1, %v62_v1  ;;  %v314_v5 = vld [vmem:[%s444_s3 + $0x20] sm:$0xff]  ;;  %v312_v7 = vld [vmem:[%s444_s3 + $0x10] sm:$0xff]  ;;  %v311_v8 = vld [vmem:[%s444_s3 + $0x8] sm:$0xff] }
   0x4   :  { %v310_v9 = vld [vmem:[%s444_s3] sm:$0xff]  ;;  %v325_v10 = vld [vmem:[%s447_s5 + $0x38] sm:$0xff]  ;;  %v324_v11 = vld [vmem:[%s447_s5 + $0x30] sm:$0xff] }
   0x5   :  { %213 = vmatpush.bf16.msra.mxu2 %v325_v10  ;;  %v323_v12 = vld [vmem:[%s447_s5 + $0x28] sm:$0xff]  ;;  %v322_v13 = vld [vmem:[%s447_s5 + $0x20] sm:$0xff]  ;;  %v321_v14 = vld [vmem:[%s447_s5 + $0x18] sm:$0xff] }
   0x6   :  { %148 = vmatpush.bf16.msra.mxu1 %v316_v3  ;;  %v320_v15 = vld [vmem:[%s447_s5 + $0x10] sm:$0xff]  ;;  %v326_v16 = vld [vmem:[%s445_s2] ss:$0 sm:$0xff]  ;;  %v319_v21 = vld [vmem:[%s447_s5 + $0x8] sm:$0xff] }
   0x7   :  { %v318_v22 = vld [vmem:[%s447_s5] sm:$0xff] }
   0x8   :  { %v327_v23 = vld [vmem:[%s446_s4] ss:$0 sm:$0xff] }
   0x9   :  { %214 = vmatpush.bf16.msra.mxu2 %v324_v11  ;;  %v328_v29 = vld [vmem:[%s448_s6] ss:$0 sm:$0xff] }
   0xa   :  { %149 = vmatpush.bf16.msra.mxu1 %v315_v4 }
   0xd   :  { %215 = vmatpush.bf16.msra.mxu2 %v323_v12 }
   0xe   :  { %150 = vmatpush.bf16.msra.mxu1 %v314_v5 }
  0x11   :  { %216 = vmatpush.bf16.msra.mxu2 %v322_v13 }
  0x12   :  { %151 = vmatpush.bf16.msra.mxu1 %v313_v6 }
  0x15   :  { %217 = vmatpush.bf16.msra.mxu2 %v321_v14 }
  0x16   :  { %152 = vmatpush.bf16.msra.mxu1 %v312_v7 }
  0x19   :  { %218 = vmatpush.bf16.msra.mxu2 %v320_v15 }
  0x1a   :  { %153 = vmatpush.bf16.msra.mxu1 %v311_v8 }
  0x1d   :  { %219 = vmatpush.bf16.msra.mxu2 %v319_v21 }
  0x1e   :  { %154 = vmatpush.bf16.msra.mxu1 %v310_v9 }
  0x21   :  { %220 = vmatpush.bf16.msra.mxu2 %v318_v22 }
  0x80   :  { %v91_v17 = vpop.f32.mrf.mxu0 }
  0x81   :  { %v92_v18 = vadd.f32 %v326_v16, %v91_v17 }
  0x83   :  { %v94_v19 = vmax.f32 %v92_v18, 0.0 }
  0x85   :  { %v95_v20 = vpack.c.bf16 %v94_v19, %v94_v19 }
  0x87   :  { %155 = vmatmul.bf16.vlgmr.msra.gmra.mxu1 %v95_v20 }
 0x104   :  { %v156_v24 = vpop.f32.mrf.mxu1 }
 0x105   :  { %v157_v25 = vadd.f32 %v327_v23, %v156_v24 }
 0x107   :  { %v160_v26 = vmax.f32 %v157_v25, 0.0 }
 0x109   :  { %v161_v27 = vpack.c.bf16 %v160_v26, %v160_v26 }
 0x10b   :  { %221 = vmatmul.bf16.vlgmr.msra.gmra.mxu2 %v161_v27 }
 0x10c   :  { %v158_v28 = vpop.f32.mrf.mxu1 }
 0x18e   :  { %v222_v30 = vpop.f32.mrf.mxu2 }
 0x18f   :  { %v223_v31 = vadd.f32 %v328_v29, %v222_v30 }
 0x191   :  { %v227_v32 = vsel %vm226_vm2, %v223_v31, -inf }
 0x192   :  { %228 = vmax.xlane.f32.xlu0 %v227_v32 }
 0x196   :  { %v224_v33 = vpop.f32.mrf.mxu2 }
 0x205   :  { %v229_v34 = vpop.xlane.xlu0 %228 }
 0x206   :  { %v230_v35 = vsub.f32 %v223_v31, %v229_v34 }
 0x208   :  { %v231_v36 = vmul.f32 1.442695, %v230_v35 }
 0x20a   :  { %329 = vpow2.f32 %v231_v36 }
 0x210   :  { %v330_v37 = vpop.eup %329 }
 0x211   :  { %v233_v38 = vsel %vm226_vm2, %v330_v37, 0.0 }
 0x212   :  { %234 = vadd.xlane.f32.xlu0 %v233_v38 }
 0x285   :  { %v235_v39 = vpop.xlane.xlu0 %234 }
 0x286   :  { %331 = vlog2.f32 %v235_v39 }
 0x28c   :  { %v332_v40 = vpop.eup %331 }
 0x28d   :  { %v237_v41 = vmul.f32 0.6931472, %v332_v40 }
 0x28f   :  { %v238_v42 = vsub.f32 %v230_v35, %v237_v41 }
 0x291   :  { %239 = vst.msk [vmem:[%s449_s7] sm:$0xff] %vm226_vm2, %v238_v42 }

</bundles_post_ra>
